<compile_context>
chip_gen: v7x
topology: tpu7x:2x2x1
jax: 0.10.0
libtpu: 0.0.40
codegen_flags: <defaults>
</compile_context>

<pallas_src>
import jax
import jax.numpy as jnp
from jax.experimental import pallas as pl
from jax.experimental.pallas import tpu as pltpu

LANE = 128


def _cdiv(a, b):
    return (a + b - 1) // b


def _round_up(n, m):
    return ((n + m - 1) // m) * m


def _pad2d(a, rows, cols):
    r, c = a.shape
    if rows == r and cols == c:
        return a
    return jnp.pad(a, ((0, rows - r), (0, cols - c)))


# --------------------------------------------------------------------------
# Kernel
# --------------------------------------------------------------------------
def mlp_kernel(x_ref, w1_ref, b1_ref, w2_ref, b2_ref,
               w3_ref, b3_ref, w4_ref, b4_ref, o_ref):
    # x arrives f32 from HBM; cast to bf16 in-kernel (rides the VPU slot).
    x = x_ref[...].astype(jnp.bfloat16)
    # Layer 1: bf16 matmul on the MXU, f32 accumulate, f32 bias + ReLU.
    h = jnp.dot(x, w1_ref[...], preferred_element_type=jnp.float32)
    h = jnp.maximum(h + b1_ref[...], 0.0).astype(jnp.bfloat16)
    # Layer 2
    h = jnp.dot(h, w2_ref[...], preferred_element_type=jnp.float32)
    h = jnp.maximum(h + b2_ref[...], 0.0).astype(jnp.bfloat16)
    # Layer 3
    h = jnp.dot(h, w3_ref[...], preferred_element_type=jnp.float32)
    h = jnp.maximum(h + b3_ref[...], 0.0).astype(jnp.bfloat16)
    # Layer 4 (no activation) — lane-dense (128-padded) output store.
    out = jnp.dot(h, w4_ref[...], preferred_element_type=jnp.float32) + b4_ref[...]
    o_ref[...] = out.astype(o_ref.dtype)


# --------------------------------------------------------------------------
# One-time parameter preparation (pad + bf16 cast hoisted out of forward)
# --------------------------------------------------------------------------
def prepare_params(params):
    """Pad feature dims to multiples of 128 and cast weights to bf16, once.

    params: w1..w4 stored [in, out] f32, b1..b4 stored [1, out] f32.
    """
    in_dim, h1 = params["w1"].shape
    h2 = params["w2"].shape[1]
    h3 = params["w3"].shape[1]          # 64 in the reference model
    nc = params["w4"].shape[1]

    in_p = _round_up(in_dim, LANE)
    h1_p = _round_up(h1, LANE)
    h2_p = _round_up(h2, LANE)
    h3_p = _round_up(h3, LANE)
    nc_p = _round_up(nc, LANE)

    prep = {
        "w1": _pad2d(params["w1"], in_p, h1_p).astype(jnp.bfloat16),
        "w2": _pad2d(params["w2"], h1_p, h2_p).astype(jnp.bfloat16),
        "w3": _pad2d(params["w3"], h2_p, h3_p).astype(jnp.bfloat16),
        "w4": _pad2d(params["w4"], h3_p, nc_p).astype(jnp.bfloat16),
        "b1": _pad2d(params["b1"], 1, h1_p).astype(jnp.float32),
        "b2": _pad2d(params["b2"], 1, h2_p).astype(jnp.float32),
        "b3": _pad2d(params["b3"], 1, h3_p).astype(jnp.float32),
        "b4": _pad2d(params["b4"], 1, nc_p).astype(jnp.float32),
        "dims": (in_dim, nc),
        "padded_dims": (in_p, h1_p, h2_p, h3_p, nc_p),
    }
    return prep


def _choose_tiling(B, tb_max):
    """Pick (tb, B_pad): 16-aligned tiles, small padding waste, >=2 tiles when
    there is enough work (so v7x's second TensorCore gets a shard)."""
    B16 = _round_up(B, 16)
    nt = max(1, _cdiv(B16, tb_max))
    if nt == 1 and B16 >= 512:
        nt = 2                      # megacore: give the 2nd TC a tile
    tb = _round_up(_cdiv(B16, nt), 16)
    return tb, tb * nt


# --------------------------------------------------------------------------
# Forward wrapper
# --------------------------------------------------------------------------
def mlp_forward(x, prep, *, tb_max=1024):
    """x: [B, input_size] f32. prep: output of prepare_params()."""
    B, in_dim = x.shape
    in_dim_p0, nc = prep["dims"]
    assert in_dim == in_dim_p0, "input feature dim mismatch with prepared params"
    in_p, h1_p, h2_p, h3_p, nc_p = prep["padded_dims"]

    tb, B_pad = _choose_tiling(B, tb_max)

    # Pad x only if needed (batch to tile multiple, features to 128). x stays
    # f32 in HBM; the bf16 cast happens inside the kernel.
    if B_pad != B or in_p != in_dim:
        x = jnp.pad(x, ((0, B_pad - B), (0, in_p - in_dim)))

    grid = (B_pad // tb,)

    def resident(shape):
        # Weights/biases: constant block index -> DMA'd once, stay VMEM-resident.
        return pl.BlockSpec(shape, lambda i: (0, 0))

    # Rough per-call VMEM footprint; raise the scoped limit only when it nears
    # v5e's 16 MiB default (v6e/v7x defaults are 32 MiB).
    weight_bytes = 2 * 2 * (in_p * h1_p + h1_p * h2_p + h2_p * h3_p + h3_p * nc_p)
    est = (2 * tb * in_p * 4            # double-buffered f32 x tile
           + 2 * tb * nc_p * 4          # double-buffered f32 out tile
           + weight_bytes
           + 4 * tb * max(h1_p, h2_p, h3_p, nc_p) * 4)  # live f32 intermediates
    compiler_kwargs = dict(dimension_semantics=("parallel",))
    if est > 12 * 1024 * 1024:
        compiler_kwargs["vmem_limit_bytes"] = min(est + (4 << 20), 60 * 1024 * 1024)

    out = pl.pallas_call(
        mlp_kernel,
        out_shape=jax.ShapeDtypeStruct((B_pad, nc_p), jnp.float32),
        grid=grid,
        in_specs=[
            pl.BlockSpec((tb, in_p), lambda i: (i, 0)),      # x: batch-tiled
            resident((in_p, h1_p)), resident((1, h1_p)),
            resident((h1_p, h2_p)), resident((1, h2_p)),
            resident((h2_p, h3_p)), resident((1, h3_p)),
            resident((h3_p, nc_p)), resident((1, nc_p)),
        ],
        out_specs=pl.BlockSpec((tb, nc_p), lambda i: (i, 0)),
        compiler_params=pltpu.CompilerParams(**compiler_kwargs),
    )(x, prep["w1"], prep["b1"], prep["w2"], prep["b2"],
      prep["w3"], prep["b3"], prep["w4"], prep["b4"])

    # Drop batch padding and the padded logit lanes outside the kernel.
    return out[:B, :nc]


# --------------------------------------------------------------------------
# Init + reference
# --------------------------------------------------------------------------
def init_params(key, input_size, hidden_size1, hidden_size2, num_classes):
    """Deterministic init mimicking nn.Linear's U(-1/sqrt(fan_in), 1/sqrt(fan_in))."""
    dims = [(input_size, hidden_size1),
            (hidden_size1, hidden_size2),
            (hidden_size2, 64),
            (64, num_classes)]
    params = {}
    for i, (fan_in, fan_out) in enumerate(dims, start=1):
        key, kw, kb = jax.random.split(key, 3)
        bound = 1.0 / jnp.sqrt(jnp.float32(fan_in))
        params[f"w{i}"] = jax.random.uniform(
            kw, (fan_in, fan_out), jnp.float32, -bound, bound)
        params[f"b{i}"] = jax.random.uniform(
            kb, (1, fan_out), jnp.float32, -bound, bound)
    return params


def reference_forward(x, params):
    """Same math as the PyTorch module; emulates the kernel's bf16-weight /
    f32-accumulate numerics so the comparison is tight."""
    def lin(h, w, b):
        return jnp.dot(h.astype(jnp.bfloat16), w.astype(jnp.bfloat16),
                       preferred_element_type=jnp.float32) + b
    h = jnp.maximum(lin(x, params["w1"], params["b1"]), 0.0)
    h = jnp.maximum(lin(h, params["w2"], params["b2"]), 0.0)
    h = jnp.maximum(lin(h, params["w3"], params["b3"]), 0.0)
    return lin(h, params["w4"], params["b4"])


if __name__ == "__main__":
    # Small shapes consistent with the MLP forward pass.
    B = 8
    input_size = 256
    hidden_size1 = 128
    hidden_size2 = 128
    num_classes = 10

    key = jax.random.PRNGKey(0)
    key, kx = jax.random.split(key)
    x = jax.random.normal(kx, (B, input_size), jnp.float32)
    params = init_params(key, input_size, hidden_size1, hidden_size2, num_classes)

    prep = prepare_params(params)          # one-time pad + bf16 cast
    out = mlp_forward(x, prep)
    out = jax.block_until_ready(out)

    ref = reference_forward(x, params)
    assert out.shape == (B, num_classes)
    assert jnp.allclose(out, ref, atol=2e-2, rtol=2e-2), "mismatch vs reference"

    print("KERNEL_OK")
</pallas_src>

<mosaic_0001>
module attributes {stable_mosaic.version = 11 : i64} {
  func.func @mlp_kernel(%arg0: i32, %arg1: memref<16x256xf32, #tpu.memory_space<vmem>>, %arg2: memref<256x128xbf16, #tpu.memory_space<vmem>>, %arg3: memref<1x128xf32, #tpu.memory_space<vmem>>, %arg4: memref<128x128xbf16, #tpu.memory_space<vmem>>, %arg5: memref<1x128xf32, #tpu.memory_space<vmem>>, %arg6: memref<128x128xbf16, #tpu.memory_space<vmem>>, %arg7: memref<1x128xf32, #tpu.memory_space<vmem>>, %arg8: memref<128x128xbf16, #tpu.memory_space<vmem>>, %arg9: memref<1x128xf32, #tpu.memory_space<vmem>>, %arg10: memref<16x128xf32, #tpu.memory_space<vmem>>) attributes {dimension_semantics = [#tpu.dimension_semantics<parallel>], iteration_bounds = array<i64: 1>, scalar_prefetch = 0 : i64, scratch_operands = 0 : i64, tpu.core_type = #tpu.core_type<tc>, window_params = [{transform_indices = @transform_0, window_bounds = array<i64: 16, 256>}, {pipeline_mode = #tpu.pipeline_mode<synchronous>, transform_indices = @transform_1, window_bounds = array<i64: 256, 128>}, {pipeline_mode = #tpu.pipeline_mode<synchronous>, transform_indices = @transform_2, window_bounds = array<i64: 1, 128>}, {pipeline_mode = #tpu.pipeline_mode<synchronous>, transform_indices = @transform_3, window_bounds = array<i64: 128, 128>}, {pipeline_mode = #tpu.pipeline_mode<synchronous>, transform_indices = @transform_4, window_bounds = array<i64: 1, 128>}, {pipeline_mode = #tpu.pipeline_mode<synchronous>, transform_indices = @transform_5, window_bounds = array<i64: 128, 128>}, {pipeline_mode = #tpu.pipeline_mode<synchronous>, transform_indices = @transform_6, window_bounds = array<i64: 1, 128>}, {pipeline_mode = #tpu.pipeline_mode<synchronous>, transform_indices = @transform_7, window_bounds = array<i64: 128, 128>}, {pipeline_mode = #tpu.pipeline_mode<synchronous>, transform_indices = @transform_8, window_bounds = array<i64: 1, 128>}, {transform_indices = @transform_9, window_bounds = array<i64: 16, 128>}]} {
    %c0 = arith.constant 0 : index
    %c0_0 = arith.constant 0 : index
    %0 = vector.load %arg1[%c0, %c0_0] : memref<16x256xf32, #tpu.memory_space<vmem>>, vector<16x256xf32>
    %1 = arith.truncf %0 : vector<16x256xf32> to vector<16x256xbf16>
    %c0_1 = arith.constant 0 : index
    %c0_2 = arith.constant 0 : index
    %2 = vector.load %arg2[%c0_1, %c0_2] : memref<256x128xbf16, #tpu.memory_space<vmem>>, vector<256x128xbf16>
    %cst = arith.constant dense<0.000000e+00> : vector<16x128xf32>
    %3 = tpu.matmul %1, %2, %cst {dimension_numbers = #tpu.dot_dimension_numbers<[1], [0], [0], [1], [0, 0, 1, 1], [], []>} : vector<16x256xbf16>, vector<256x128xbf16>, vector<16x128xf32> -> vector<16x128xf32>
    %c0_3 = arith.constant 0 : index
    %c0_4 = arith.constant 0 : index
    %4 = vector.load %arg3[%c0_3, %c0_4] : memref<1x128xf32, #tpu.memory_space<vmem>>, vector<1x128xf32>
    %5 = vector.broadcast %4 : vector<1x128xf32> to vector<16x128xf32>
    %6 = arith.addf %3, %5 : vector<16x128xf32>
    %cst_5 = arith.constant 0.000000e+00 : f32
    %7 = vector.broadcast %cst_5 : f32 to vector<16x128xf32>
    %8 = arith.maximumf %6, %7 : vector<16x128xf32>
    %9 = arith.truncf %8 : vector<16x128xf32> to vector<16x128xbf16>
    %c0_6 = arith.constant 0 : index
    %c0_7 = arith.constant 0 : index
    %10 = vector.load %arg4[%c0_6, %c0_7] : memref<128x128xbf16, #tpu.memory_space<vmem>>, vector<128x128xbf16>
    %cst_8 = arith.constant dense<0.000000e+00> : vector<16x128xf32>
    %11 = tpu.matmul %9, %10, %cst_8 {dimension_numbers = #tpu.dot_dimension_numbers<[1], [0], [0], [1], [0, 0, 1, 1], [], []>} : vector<16x128xbf16>, vector<128x128xbf16>, vector<16x128xf32> -> vector<16x128xf32>
    %c0_9 = arith.constant 0 : index
    %c0_10 = arith.constant 0 : index
    %12 = vector.load %arg5[%c0_9, %c0_10] : memref<1x128xf32, #tpu.memory_space<vmem>>, vector<1x128xf32>
    %13 = vector.broadcast %12 : vector<1x128xf32> to vector<16x128xf32>
    %14 = arith.addf %11, %13 : vector<16x128xf32>
    %cst_11 = arith.constant 0.000000e+00 : f32
    %15 = vector.broadcast %cst_11 : f32 to vector<16x128xf32>
    %16 = arith.maximumf %14, %15 : vector<16x128xf32>
    %17 = arith.truncf %16 : vector<16x128xf32> to vector<16x128xbf16>
    %c0_12 = arith.constant 0 : index
    %c0_13 = arith.constant 0 : index
    %18 = vector.load %arg6[%c0_12, %c0_13] : memref<128x128xbf16, #tpu.memory_space<vmem>>, vector<128x128xbf16>
    %cst_14 = arith.constant dense<0.000000e+00> : vector<16x128xf32>
    %19 = tpu.matmul %17, %18, %cst_14 {dimension_numbers = #tpu.dot_dimension_numbers<[1], [0], [0], [1], [0, 0, 1, 1], [], []>} : vector<16x128xbf16>, vector<128x128xbf16>, vector<16x128xf32> -> vector<16x128xf32>
    %c0_15 = arith.constant 0 : index
    %c0_16 = arith.constant 0 : index
    %20 = vector.load %arg7[%c0_15, %c0_16] : memref<1x128xf32, #tpu.memory_space<vmem>>, vector<1x128xf32>
    %21 = vector.broadcast %20 : vector<1x128xf32> to vector<16x128xf32>
    %22 = arith.addf %19, %21 : vector<16x128xf32>
    %cst_17 = arith.constant 0.000000e+00 : f32
    %23 = vector.broadcast %cst_17 : f32 to vector<16x128xf32>
    %24 = arith.maximumf %22, %23 : vector<16x128xf32>
    %25 = arith.truncf %24 : vector<16x128xf32> to vector<16x128xbf16>
    %c0_18 = arith.constant 0 : index
    %c0_19 = arith.constant 0 : index
    %26 = vector.load %arg8[%c0_18, %c0_19] : memref<128x128xbf16, #tpu.memory_space<vmem>>, vector<128x128xbf16>
    %cst_20 = arith.constant dense<0.000000e+00> : vector<16x128xf32>
    %27 = tpu.matmul %25, %26, %cst_20 {dimension_numbers = #tpu.dot_dimension_numbers<[1], [0], [0], [1], [0, 0, 1, 1], [], []>} : vector<16x128xbf16>, vector<128x128xbf16>, vector<16x128xf32> -> vector<16x128xf32>
    %c0_21 = arith.constant 0 : index
    %c0_22 = arith.constant 0 : index
    %28 = vector.load %arg9[%c0_21, %c0_22] : memref<1x128xf32, #tpu.memory_space<vmem>>, vector<1x128xf32>
    %29 = vector.broadcast %28 : vector<1x128xf32> to vector<16x128xf32>
    %30 = arith.addf %27, %29 : vector<16x128xf32>
    %c0_23 = arith.constant 0 : index
    %c0_24 = arith.constant 0 : index
    %31 = vector.load %arg10[%c0_23, %c0_24] : memref<16x128xf32, #tpu.memory_space<vmem>>, vector<16x128xf32>
    tpu.vector_store %arg10[%c0_23, %c0_24], %30 {strides = array<i32>} : memref<16x128xf32, #tpu.memory_space<vmem>>, vector<16x128xf32>,
    return
  }
  func.func @transform_0(%arg0: i32) -> (i32, i32) {
    %c0_i32 = arith.constant 0 : i32
    %c0_i32_0 = arith.constant 0 : i32
    return %arg0, %c0_i32 : i32, i32
  }
  func.func @transform_1(%arg0: i32) -> (i32, i32) {
    %c0_i32 = arith.constant 0 : i32
    %c0_i32_0 = arith.constant 0 : i32
    %c0_i32_1 = arith.constant 0 : i32
    return %c0_i32, %c0_i32_0 : i32, i32
  }
  func.func @transform_2(%arg0: i32) -> (i32, i32) {
    %c0_i32 = arith.constant 0 : i32
    %c0_i32_0 = arith.constant 0 : i32
    %c0_i32_1 = arith.constant 0 : i32
    return %c0_i32, %c0_i32_0 : i32, i32
  }
  func.func @transform_3(%arg0: i32) -> (i32, i32) {
    %c0_i32 = arith.constant 0 : i32
    %c0_i32_0 = arith.constant 0 : i32
    %c0_i32_1 = arith.constant 0 : i32
    return %c0_i32, %c0_i32_0 : i32, i32
  }
  func.func @transform_4(%arg0: i32) -> (i32, i32) {
    %c0_i32 = arith.constant 0 : i32
    %c0_i32_0 = arith.constant 0 : i32
    %c0_i32_1 = arith.constant 0 : i32
    return %c0_i32, %c0_i32_0 : i32, i32
  }
  func.func @transform_5(%arg0: i32) -> (i32, i32) {
    %c0_i32 = arith.constant 0 : i32
    %c0_i32_0 = arith.constant 0 : i32
    %c0_i32_1 = arith.constant 0 : i32
    return %c0_i32, %c0_i32_0 : i32, i32
  }
  func.func @transform_6(%arg0: i32) -> (i32, i32) {
    %c0_i32 = arith.constant 0 : i32
    %c0_i32_0 = arith.constant 0 : i32
    %c0_i32_1 = arith.constant 0 : i32
    return %c0_i32, %c0_i32_0 : i32, i32
  }
  func.func @transform_7(%arg0: i32) -> (i32, i32) {
    %c0_i32 = arith.constant 0 : i32
    %c0_i32_0 = arith.constant 0 : i32
    %c0_i32_1 = arith.constant 0 : i32
    return %c0_i32, %c0_i32_0 : i32, i32
  }
  func.func @transform_8(%arg0: i32) -> (i32, i32) {
    %c0_i32 = arith.constant 0 : i32
    %c0_i32_0 = arith.constant 0 : i32
    %c0_i32_1 = arith.constant 0 : i32
    return %c0_i32, %c0_i32_0 : i32, i32
  }
  func.func @transform_9(%arg0: i32) -> (i32, i32) {
    %c0_i32 = arith.constant 0 : i32
    %c0_i32_0 = arith.constant 0 : i32
    return %arg0, %c0_i32 : i32, i32
  }
}

</mosaic_0001>

<bundles_post_ra>
// kernel: tpu_custom_call.1
= control target key start
LH: loop header
LB: loop body
LE: loop exit
PB: predicated region body
PF: predicated region fallthrough
CT: control target
= control target key end

     0   :  { %14 = vsyncpa [#allocation3], 0  ;;  %s1187_s0 = inlined_call_operand.hbm [shape: f32[16,256], index: 0, kind: input, shape index: {}]   ;;  %s1188_s1 = inlined_call_operand.hbm [shape: bf16[256,128], index: 1, kind: input, shape index: {}]   ;;  %s1189_s2 = inlined_call_operand.vmem [shape: f32[1,128], index: 2, kind: input, shape index: {}]   ;;  %s1190_s3 = inlined_call_operand.hbm [shape: bf16[128,128], index: 3, kind: input, shape index: {}]   ;;  %s1191_s4 = inlined_call_operand.vmem [shape: f32[1,128], index: 4, kind: input, shape index: {}]   ;;  %s1192_s5 = inlined_call_operand.hbm [shape: bf16[128,128], index: 5, kind: input, shape index: {}]   ;;  %s1193_s6 = inlined_call_operand.vmem [shape: f32[1,128], index: 6, kind: input, shape index: {}]   ;;  %s1194_s7 = inlined_call_operand.hbm [shape: bf16[128,128], index: 7, kind: input, shape index: {}]   ;;  %s1195_s8 = inlined_call_operand.vmem [shape: f32[1,128], index: 8, kind: input, shape index: {}]   ;;  %s1196_s9 = inlined_call_operand.hbm [shape: f32[16,128], index: 9, kind: output, shape index: {}]  }
   0x1   :  { %15 = vsyncpa [#allocation6], 0 }
   0x2   :  { %16 = vsyncpa [#allocation9], 0 }
   0x3   :  { %17 = vsyncpa [#allocation4], 0  ;;  %s997_s30 = smov [#allocation5]   ;;  %s857_s13 = scalar_lea.hbm %s1188_s1, 2048 }
   0x4   :  { %s35_s10 = sshll.u32 %s997_s30, 4  ;;  %p858_p0 = scmp.ne.s32.totalorder %s1188_s1, %s857_s13  ;;  %s36_s10 = int_to_ptr.vmem [resolvable:$true] %s35_s10 }
   0x5   :  { %p861_p1 = scmp.lt.u32.totalorder %s857_s13, %s1188_s1 }
   0x7   :  { %p863_p2 = pnand %p861_p1, %p858_p0 }
   0x9   :  { %866 = shalt.err (!%p863_p2)
}
   0xa   :  { %s867_s18 = scalar_lea.vmem %s36_s10, 2048  ;;  %p872_p4 = scmp.lt.s32.totalorder %s36_s10, %s36_s10 }
   0xb   :  { %p868_p3 = scmp.ne.s32.totalorder %s36_s10, %s867_s18  ;;  %p873_p5 = scmp.lt.s32.totalorder %s867_s18, %s867_s18 }
   0xd   :  { %p874_p6 = por %p873_p5, %p872_p4 }
   0xf   :  { %p875_p7 = pnand %p874_p6, %p868_p3 }
  0x11   :  { %878 = shalt.err (!%p875_p7)
}
  0x12   :  { %s998_s19 = smov 64   ;;  %s999_s20 = smov 4  }
  0x13   :  { %41 = dma.hbm_to_vmem [thread:$0]  %s1188_s1, 2048, %s36_s10, [#allocation6], %s998_s19, %s998_s19, %s999_s20  }
  0x14   :  { %s1000_s23 = smov [#allocation8]   ;;  %s1001_s25 = smov [#allocation2]  }
  0x15   :  { %s63_s24 = sshll.u32 %s1000_s23, 4  ;;  %s23_s26 = sshll.u32 %s1001_s25, 4  ;;  %s64_s24 = int_to_ptr.vmem [resolvable:$true] %s63_s24  ;;  %s24_s26 = int_to_ptr.vmem [resolvable:$true] %s23_s26 }
  0x16   :  { %s879_s29 = scalar_lea.hbm %s1192_s5, 1024 }
  0x17   :  { %p880_p8 = scmp.ne.s32.totalorder %s1192_s5, %s879_s29  ;;  %p883_p9 = scmp.lt.u32.totalorder %s879_s29, %s1192_s5 }
  0x19   :  { %p885_p10 = pnand %p883_p9, %p880_p8 }
  0x1b   :  { %888 = shalt.err (!%p885_p10)
}
  0x1c   :  { %s889_s1 = scalar_lea.vmem %s64_s24, 1024  ;;  %p894_p12 = scmp.lt.s32.totalorder %s64_s24, %s64_s24 }
  0x1d   :  { %p890_p11 = scmp.ne.s32.totalorder %s64_s24, %s889_s1  ;;  %p895_p13 = scmp.lt.s32.totalorder %s889_s1, %s889_s1 }
  0x1f   :  { %p896_p0 = por %p895_p13, %p894_p12 }
  0x21   :  { %p897_p1 = pnand %p896_p0, %p890_p11 }
  0x23   :  { %900 = shalt.err (!%p897_p1)
}
  0x24   :  { %69 = dma.hbm_to_vmem [thread:$0]  %s1192_s5, 1024, %s64_s24, [#allocation9], %s998_s19, %s998_s19, %s999_s20  }
  0x25   :  { %s901_s17 = scalar_lea.hbm %s1187_s0, 512 }
  0x26   :  { %p902_p2 = scmp.ne.s32.totalorder %s1187_s0, %s901_s17  ;;  %p905_p3 = scmp.lt.u32.totalorder %s901_s17, %s1187_s0 }
  0x28   :  { %p907_p4 = pnand %p905_p3, %p902_p2 }
  0x2a   :  { %910 = shalt.err (!%p907_p4)
}
  0x2b   :  { %s911_s25 = scalar_lea.vmem %s24_s26, 512  ;;  %p916_p6 = scmp.lt.s32.totalorder %s24_s26, %s24_s26 }
  0x2c   :  { %p912_p5 = scmp.ne.s32.totalorder %s24_s26, %s911_s25  ;;  %p917_p7 = scmp.lt.s32.totalorder %s911_s25, %s911_s25 }
  0x2e   :  { %p918_p8 = por %p917_p7, %p916_p6 }
  0x30   :  { %p919_p9 = pnand %p918_p8, %p912_p5 }
  0x32   :  { %922 = shalt.err (!%p919_p9)
}
  0x33   :  { %s1002_s5 = smov 256   ;;  %s1003_s24 = smov 16  }
  0x34   :  { %29 = dma.hbm_to_vmem [thread:$0]  %s1187_s0, 512, %s24_s26, [#allocation3], %s1002_s5, %s1002_s5, %s1003_s24  }
  0x35   :  { %s1004_s29 = smov [#allocation7]   ;;  %s1005_s11 = smov [#allocation10]  }
  0x36   :  { %s49_s30 = sshll.u32 %s1004_s29, 4  ;;  %s77_s12 = sshll.u32 %s1005_s11, 4  ;;  %s50_s30 = int_to_ptr.vmem [resolvable:$true] %s49_s30  ;;  %s78_s12 = int_to_ptr.vmem [resolvable:$true] %s77_s12 }
  0x37   :  { %s923_s10 = scalar_lea.hbm %s1190_s3, 1024 }
  0x38   :  { %p924_p10 = scmp.ne.s32.totalorder %s1190_s3, %s923_s10  ;;  %p927_p11 = scmp.lt.u32.totalorder %s923_s10, %s1190_s3 }
  0x3a   :  { %p929_p12 = pnand %p927_p11, %p924_p10 }
  0x3c   :  { %932 = shalt.err (!%p929_p12)
}
  0x3d   :  { %s933_s0 = scalar_lea.vmem %s50_s30, 1024  ;;  %p938_p0 = scmp.lt.s32.totalorder %s50_s30, %s50_s30 }
  0x3e   :  { %p934_p13 = scmp.ne.s32.totalorder %s50_s30, %s933_s0  ;;  %p939_p1 = scmp.lt.s32.totalorder %s933_s0, %s933_s0 }
  0x40   :  { %p940_p2 = por %p939_p1, %p938_p0 }
  0x42   :  { %p941_p3 = pnand %p940_p2, %p934_p13 }
  0x44   :  { %944 = shalt.err (!%p941_p3)
}
  0x45   :  { %55 = dma.hbm_to_vmem [thread:$0]  %s1190_s3, 1024, %s50_s30, [#allocation6], %s998_s19, %s998_s19, %s999_s20  }
  0x46   :  { %s945_s23 = scalar_lea.hbm %s1194_s7, 1024 }
  0x47   :  { %p946_p4 = scmp.ne.s32.totalorder %s1194_s7, %s945_s23  ;;  %p949_p5 = scmp.lt.u32.totalorder %s945_s23, %s1194_s7 }
  0x49   :  { %p951_p6 = pnand %p949_p5, %p946_p4 }
  0x4b   :  { %954 = shalt.err (!%p951_p6)
}
  0x4c   :  { %s955_s28 = scalar_lea.vmem %s78_s12, 1024  ;;  %p960_p8 = scmp.lt.s32.totalorder %s78_s12, %s78_s12 }
  0x4d   :  { %p956_p7 = scmp.ne.s32.totalorder %s78_s12, %s955_s28  ;;  %p961_p9 = scmp.lt.s32.totalorder %s955_s28, %s955_s28 }
  0x4f   :  { %p962_p10 = por %p961_p9, %p960_p8 }
  0x51   :  { %p963_p11 = pnand %p962_p10, %p956_p7 }
  0x53   :  { %966 = shalt.err (!%p963_p11)
}
  0x54   :  { %83 = dma.hbm_to_vmem [thread:$0]  %s1194_s7, 1024, %s78_s12, [#allocation9], %s998_s19, %s998_s19, %s999_s20  }
  0x55   :  { %989 = dma.done.wait [#allocation3], 512  }
  0x56   :  { %990 = vsyncadd [#allocation3], 4294966784 }
  0x57   :  { %991 = dma.done.wait [#allocation6], 3072  }
  0x58   :  { %992 = vsyncadd [#allocation6], 4294964224 }
  0x59   :  { %993 = dma.done.wait [#allocation9], 2048  }
  0x5a   :  { %994 = vsyncadd [#allocation9], 4294965248  ;;  %v1006_v0 = vmov 0.0   ;;  %v817_v1 = vld [vmem:[#allocation5 + $0x40] sm:$0xff]   ;;  %v819_v3 = vld [vmem:[#allocation5 + $0x48] sm:$0xff]   ;;  %vm1007_vm0 = vmmov 0  }
  0x5b   :  { %743 = vmatprep.subr.bf16.mxu1 %v1006_v0  ;;  %v818_v2 = vld [vmem:[#allocation5] sm:$0xff]   ;;  %694 = vmatprep.subr.bf16.mxu0 %v817_v1  ;;  %v820_v4 = vld [vmem:[#allocation5 + $0x8] sm:$0xff]   ;;  %v821_v5 = vld [vmem:[#allocation5 + $0x50] sm:$0xff]   ;;  %s1008_s13 = smov [#allocation11]  }
  0x5c   :  { %695 = vmatpush3.bf16.msra.mxu0 %v818_v2  ;;  %v822_v6 = vld [vmem:[#allocation5 + $0x10] sm:$0xff]   ;;  %v823_v7 = vld [vmem:[#allocation5 + $0x58] sm:$0xff]   ;;  %v825_v9 = vld [vmem:[#allocation5 + $0x60] sm:$0xff]   ;;  %759 = vmatprep.mubr.msk.bf16.mxu1 %vm1007_vm0, %v1006_v0  ;;  %s636_s1 = sshll.u32 %s1008_s13, 4  ;;  %s637_s1 = int_to_ptr.vmem [resolvable:$true] %s636_s1 }
  0x5d   :  { %696 = vmatprep.subr.bf16.mxu0 %v819_v3  ;;  %v824_v8 = vld [vmem:[#allocation5 + $0x18] sm:$0xff]   ;;  %v826_v10 = vld [vmem:[#allocation5 + $0x20] sm:$0xff]   ;;  %v827_v11 = vld [vmem:[#allocation5 + $0x68] sm:$0xff]   ;;  %p972_p13 = scmp.lt.s32.totalorder %s637_s1, %s637_s1 }
  0x5e   :  { %v103_v12 = vld [vmem:[#allocation2 + $0x8] sm:$0xff]  ;;  %v105_v13 = vld [vmem:[#allocation2 + $0x18] sm:$0xff]  ;;  %v833_v16 = vld [vmem:[#allocation7] sm:$0xff]  }
  0x5f   :  { %v828_v14 = vld [vmem:[#allocation5 + $0x28] sm:$0xff]   ;;  %v107_v15 = vpack.c.bf16 %v105_v13, %v103_v12  ;;  %v829_v17 = vld [vmem:[#allocation5 + $0x70] sm:$0xff]   ;;  %744 = vmatpush3.bf16.msra.mxu1 %v833_v16  ;;  %v831_v20 = vld [vmem:[#allocation5 + $0x78] sm:$0xff]  }
  0x60   :  { %697 = vmatpush3.bf16.msra.mxu0 %v820_v4  ;;  %v834_v18 = vld [vmem:[#allocation7 + $0x8] sm:$0xff]   ;;  %v830_v19 = vld [vmem:[#allocation5 + $0x30] sm:$0xff]   ;;  %745 = vmatprep.subr.bf16.mxu1 %v1006_v0  ;;  %v832_v22 = vld [vmem:[#allocation5 + $0x38] sm:$0xff]  }
  0x61   :  { %698 = vmatprep.subr.bf16.mxu0 %v821_v5  ;;  %275 = vmatprep.mubr.bf16.mxu0 %v107_v15  ;;  %v835_v21 = vld [vmem:[#allocation7 + $0x10] sm:$0xff]   ;;  %v102_v23 = vld [vmem:[#allocation2] sm:$0xff]  ;;  %v836_v25 = vld [vmem:[#allocation7 + $0x18] sm:$0xff]  }
  0x62   :  { %v104_v24 = vld [vmem:[#allocation2 + $0x10] sm:$0xff]  ;;  %v837_v27 = vld [vmem:[#allocation7 + $0x20] sm:$0xff]   ;;  %v838_v28 = vld [vmem:[#allocation7 + $0x28] sm:$0xff]  }
  0x63   :  { %746 = vmatpush3.bf16.msra.mxu1 %v834_v18  ;;  %v106_v26 = vpack.c.bf16 %v104_v24, %v102_v23  ;;  %v839_v29 = vld [vmem:[#allocation7 + $0x30] sm:$0xff]   ;;  %v840_v30 = vld [vmem:[#allocation7 + $0x38] sm:$0xff]   ;;  %v841_v31 = vld [vmem:[#allocation8] sm:$0xff]  }
  0x64   :  { %699 = vmatpush3.bf16.msra.mxu0 %v822_v6  ;;  %747 = vmatprep.subr.bf16.mxu1 %v1006_v0  ;;  %v842_v32 = vld [vmem:[#allocation8 + $0x8] sm:$0xff]   ;;  %v843_v33 = vld [vmem:[#allocation8 + $0x10] sm:$0xff]   ;;  %v844_v34 = vld [vmem:[#allocation8 + $0x18] sm:$0xff]  }
  0x65   :  { %700 = vmatprep.subr.bf16.mxu0 %v823_v7  ;;  %v845_v35 = vld [vmem:[#allocation8 + $0x20] sm:$0xff]   ;;  %v846_v36 = vld [vmem:[#allocation8 + $0x28] sm:$0xff]   ;;  %v847_v49 = vld [vmem:[#allocation8 + $0x30] sm:$0xff]  }
  0x66   :  { %v650_v38 = vld [vmem:[%s1189_s2] ss:$0 sm:$0xff]  ;;  %v848_v50 = vld [vmem:[#allocation8 + $0x38] sm:$0xff]   ;;  %v850_v52 = vld [vmem:[#allocation10 + $0x8] sm:$0xff]  }
  0x67   :  { %748 = vmatpush3.bf16.msra.mxu1 %v835_v21  ;;  %v849_v51 = vld [vmem:[#allocation10] sm:$0xff]   ;;  %v851_v53 = vld [vmem:[#allocation10 + $0x10] sm:$0xff]   ;;  %v852_v54 = vld [vmem:[#allocation10 + $0x18] sm:$0xff]  }
  0x68   :  { %701 = vmatpush3.bf16.msra.mxu0 %v824_v8  ;;  %749 = vmatprep.subr.bf16.mxu1 %v1006_v0  ;;  %v853_v55 = vld [vmem:[#allocation10 + $0x20] sm:$0xff]   ;;  %v854_v56 = vld [vmem:[#allocation10 + $0x28] sm:$0xff]   ;;  %v855_v4 = vld [vmem:[#allocation10 + $0x30] sm:$0xff]  }
  0x69   :  { %702 = vmatprep.subr.bf16.mxu0 %v825_v9  ;;  %v667_v57 = vld [vmem:[%s1191_s4] ss:$0 sm:$0xff]  ;;  %v856_v5 = vld [vmem:[#allocation10 + $0x38] sm:$0xff]  }
  0x6a   :  { %v676_v6 = vld [vmem:[%s1193_s6] ss:$0 sm:$0xff]  ;;  %s967_s6 = scalar_lea.vmem %s637_s1, 256 }
  0x6b   :  { %750 = vmatpush3.bf16.msra.mxu1 %v836_v25  ;;  %p968_p12 = scmp.ne.s32.totalorder %s637_s1, %s967_s6  ;;  %p973_p0 = scmp.lt.s32.totalorder %s967_s6, %s967_s6 }
  0x6c   :  { %703 = vmatpush3.bf16.msra.mxu0 %v826_v10  ;;  %751 = vmatprep.subr.bf16.mxu1 %v1006_v0 }
  0x6d   :  { %704 = vmatprep.subr.bf16.mxu0 %v827_v11  ;;  %p974_p1 = por %p973_p0, %p972_p13 }
  0x6f   :  { %752 = vmatpush3.bf16.msra.mxu1 %v837_v27  ;;  %p975_p2 = pnand %p974_p1, %p968_p12 }
  0x70   :  { %705 = vmatpush3.bf16.msra.mxu0 %v828_v14  ;;  %753 = vmatprep.subr.bf16.mxu1 %v1006_v0 }
  0x71   :  { %706 = vmatprep.subr.bf16.mxu0 %v829_v17 }
  0x73   :  { %754 = vmatpush3.bf16.msra.mxu1 %v838_v28 }
  0x74   :  { %707 = vmatpush3.bf16.msra.mxu0 %v830_v19  ;;  %755 = vmatprep.subr.bf16.mxu1 %v1006_v0 }
  0x75   :  { %708 = vmatprep.subr.bf16.mxu0 %v831_v20 }
  0x77   :  { %756 = vmatpush3.bf16.msra.mxu1 %v839_v29 }
  0x78   :  { %709 = vmatpush3.bf16.msra.mxu0 %v832_v22  ;;  %757 = vmatprep.subr.bf16.mxu1 %v1006_v0 }
  0x79   :  { %763 = vmatprep.subr.bf16.mxu0 %v1006_v0 }
  0x7b   :  { %276 = vmatmul.mubr.bf16.vlgmr.msra.gmra.mrb[0].mxu0 %v106_v26  ;;  %758 = vmatpush3.bf16.msra.mxu1 %v840_v30 }
  0x7c   :  { %779 = vmatprep.mubr.msk.bf16.mxu0 %vm1007_vm0, %v1006_v0  ;;  %783 = vmatprep.subr.bf16.mxu1 %v1006_v0 }
  0x7d   :  { %764 = vmatpush3.bf16.msra.mxu0 %v841_v31 }
  0x7e   :  { %765 = vmatprep.subr.bf16.mxu0 %v1006_v0 }
  0x81   :  { %766 = vmatpush3.bf16.msra.mxu0 %v842_v32 }
  0x82   :  { %767 = vmatprep.subr.bf16.mxu0 %v1006_v0 }
  0x85   :  { %768 = vmatpush3.bf16.msra.mxu0 %v843_v33 }
  0x86   :  { %769 = vmatprep.subr.bf16.mxu0 %v1006_v0 }
  0x89   :  { %770 = vmatpush3.bf16.msra.mxu0 %v844_v34 }
  0x8a   :  { %771 = vmatprep.subr.bf16.mxu0 %v1006_v0 }
  0x8d   :  { %772 = vmatpush3.bf16.msra.mxu0 %v845_v35 }
  0x8e   :  { %773 = vmatprep.subr.bf16.mxu0 %v1006_v0 }
  0x91   :  { %774 = vmatpush3.bf16.msra.mxu0 %v846_v36 }
  0x92   :  { %775 = vmatprep.subr.bf16.mxu0 %v1006_v0 }
  0x95   :  { %776 = vmatpush3.bf16.msra.mxu0 %v847_v49 }
  0x96   :  { %777 = vmatprep.subr.bf16.mxu0 %v1006_v0 }
  0x99   :  { %778 = vmatpush3.bf16.msra.mxu0 %v848_v50 }
 0x14e   :  { %v710_v37 = vpop.f32.mrb[0].mxu0 }
 0x14f   :  { %v711_v39 = vpop.f32.mrb[1].mxu0 }
 0x150   :  { %v712_v40 = vadd.f32 %v711_v39, %v710_v37  ;;  %v713_v41 = vpop.f32.mrb[2].mxu0 }
 0x151   :  { %v714_v42 = vpop.f32.mrb[3].mxu0 }
 0x152   :  { %v278_v43 = vadd.f32 %v712_v40, %v650_v38  ;;  %v715_v44 = vadd.f32 %v714_v42, %v713_v41 }
 0x154   :  { %v281_v45 = vadd.f32 %v715_v44, %v650_v38  ;;  %v284_v46 = vmax.f32 %v278_v43, 0.0 }
 0x156   :  { %v285_v47 = vmax.f32 %v281_v45, 0.0 }
 0x158   :  { %v286_v48 = vpack.c.bf16 %v285_v47, %v284_v46 }
 0x15a   :  { %760 = vmatmul.mubr.bf16.vlgmr.msra.gmra.mrb[0].mxu1 %v286_v48 }
 0x15b   :  { %799 = vmatprep.mubr.msk.bf16.mxu1 %vm1007_vm0, %v1006_v0  ;;  %784 = vmatpush3.bf16.msra.mxu1 %v849_v51 }
 0x15c   :  { %785 = vmatprep.subr.bf16.mxu1 %v1006_v0 }
 0x15f   :  { %786 = vmatpush3.bf16.msra.mxu1 %v850_v52 }
 0x160   :  { %787 = vmatprep.subr.bf16.mxu1 %v1006_v0 }
 0x163   :  { %788 = vmatpush3.bf16.msra.mxu1 %v851_v53 }
 0x164   :  { %789 = vmatprep.subr.bf16.mxu1 %v1006_v0 }
 0x167   :  { %790 = vmatpush3.bf16.msra.mxu1 %v852_v54 }
 0x168   :  { %791 = vmatprep.subr.bf16.mxu1 %v1006_v0 }
 0x16b   :  { %792 = vmatpush3.bf16.msra.mxu1 %v853_v55 }
 0x16c   :  { %793 = vmatprep.subr.bf16.mxu1 %v1006_v0 }
 0x16f   :  { %794 = vmatpush3.bf16.msra.mxu1 %v854_v56 }
 0x170   :  { %795 = vmatprep.subr.bf16.mxu1 %v1006_v0 }
 0x173   :  { %796 = vmatpush3.bf16.msra.mxu1 %v855_v4 }
 0x174   :  { %797 = vmatprep.subr.bf16.mxu1 %v1006_v0  ;;  %v685_v0 = vld [vmem:[%s1195_s8] ss:$0 sm:$0xff] }
 0x177   :  { %798 = vmatpush3.bf16.msra.mxu1 %v856_v5 }
 0x22d   :  { %v392_v58 = vpop.f32.mrb[0].mxu1 }
 0x22e   :  { %v393_v59 = vadd.f32 %v667_v57, %v392_v58  ;;  %v761_v60 = vpop.f32.mrb[1].mxu1 }
 0x22f   :  { %v395_v61 = vpop.f32.mrb[2].mxu1 }
 0x230   :  { %v396_v62 = vadd.f32 %v667_v57, %v395_v61  ;;  %v762_v63 = vpop.f32.mrb[3].mxu1  ;;  %v399_v1 = vmax.f32 %v393_v59, 0.0 }
 0x232   :  { %v400_v2 = vmax.f32 %v396_v62, 0.0 }
 0x234   :  { %v401_v3 = vpack.c.bf16 %v400_v2, %v399_v1 }
 0x236   :  { %780 = vmatmul.mubr.bf16.vlgmr.msra.gmra.mrb[4].mxu0 %v401_v3 }
 0x309   :  { %v507_v7 = vpop.f32.mrb[4].mxu0 }
 0x30a   :  { %v508_v8 = vadd.f32 %v676_v6, %v507_v7  ;;  %v781_v9 = vpop.f32.mrb[5].mxu0 }
 0x30b   :  { %v510_v10 = vpop.f32.mrb[6].mxu0 }
 0x30c   :  { %v511_v11 = vadd.f32 %v676_v6, %v510_v10  ;;  %v782_v12 = vpop.f32.mrb[7].mxu0  ;;  %v514_v13 = vmax.f32 %v508_v8, 0.0 }
 0x30e   :  { %v515_v14 = vmax.f32 %v511_v11, 0.0 }
 0x310   :  { %v516_v15 = vpack.c.bf16 %v515_v14, %v514_v13 }
 0x312   :  { %800 = vmatmul.mubr.bf16.vlgmr.msra.gmra.mrb[4].mxu1 %v516_v15 }
 0x3e5   :  { %v622_v16 = vpop.f32.mrb[4].mxu1 }
 0x3e6   :  { %v623_v17 = vadd.f32 %v685_v0, %v622_v16  ;;  %v801_v18 = vpop.f32.mrb[5].mxu1 }
 0x3e7   :  { %v625_v19 = vpop.f32.mrb[6].mxu1 }
 0x3e8   :  { %629 = vst [vmem:[#allocation11] sm:$0xff] %v623_v17  ;;  %v626_v20 = vadd.f32 %v685_v0, %v625_v19  ;;  %v802_v21 = vpop.f32.mrb[7].mxu1 }
 0x3ea   :  { %630 = vst [vmem:[#allocation11 + $0x8] sm:$0xff] %v626_v20 }
 0x3eb   :  { %978 = shalt.err (!%p975_p2)
}
 0x3ec   :  { %s979_s14 = scalar_lea.hbm %s1196_s9, 256 }
 0x3ed   :  { %p980_p3 = scmp.ne.s32.totalorder %s1196_s9, %s979_s14  ;;  %p983_p4 = scmp.lt.u32.totalorder %s979_s14, %s1196_s9 }
 0x3ef   :  { %p985_p5 = pnand %p983_p4, %p980_p3 }
 0x3f1   :  { %988 = shalt.err (!%p985_p5)
}
 0x3f2   :  { %s1009_s26 = smov 128   ;;  %s1010_s18 = smov 8  }
 0x3f3   :  { %642 = dma.vmem_to_hbm [thread:$0]  %s637_s1, 256, %s1196_s9, [#allocation4], %s1009_s26, %s1009_s26, %s1010_s18  }
 0x3f4   :  { %995 = dma.done.wait [#allocation4], 256  }
 0x3f5   :  { %996 = vsyncadd [#allocation4], 4294967040 }
 0x3f6   :  { %646 = vsyncpa [#allocation3], 1 }
 0x3f7   :  { %647 = vsyncpa [#allocation6], 1 }
 0x3f8   :  { %648 = vsyncpa [#allocation9], 1 }
 0x3f9   :  { %649 = vsyncpa [#allocation4], 1 }

</bundles_post_ra>
